<compile_context>
chip_gen: v7x
topology: tpu7x:2x2x1
jax: 0.10.0
libtpu: 0.0.40
codegen_flags: <defaults>
</compile_context>

<pallas_src>
import numpy as np
import jax
import jax.numpy as jnp
from jax import lax
from jax.experimental import pallas as pl
from jax.experimental.pallas import tpu as pltpu


# ----------------------------- kernel helpers -------------------------------
def _layer_norm(x, eps=1e-6):
    # nn.LayerNorm(out_dim, eps=1e-6); affine params are identity at init.
    mu = jnp.mean(x, axis=-1, keepdims=True)
    var = jnp.mean((x - mu) ** 2, axis=-1, keepdims=True)
    return (x - mu) * lax.rsqrt(var + eps)


# ------------------------------- Pallas kernel ------------------------------
def psp_kernel(thr_ref,                  # SMEM (1,) f32
               a_ref, v_ref,             # (Bblk, T, Da) / (Bblk, T, Dv)   bf16
               w_v12_ref, w_a12_ref,     # (Dv, 2H) / (Da, 2H)             bf16
               w_vfc_ref, w_afc_ref,     # (Dv, Do) / (Da, Do)             bf16
               out_ref):                 # (Bblk, T, Wpad)                 bf16
    f32, bf16 = jnp.float32, jnp.bfloat16
    thr = thr_ref[0]

    Bb, Ta, Da = a_ref.shape
    _, Tv, Dv = v_ref.shape
    H = w_v12_ref.shape[1] // 2
    Do = w_vfc_ref.shape[1]
    Wpad = out_ref.shape[2]
    rows = Bb * Tv

    a16 = a_ref[...]
    v16 = v_ref[...]

    # Fused branch projections + ReLU (dropout = identity in eval mode):
    # one lane-dense [Bblk*T, D] @ [D, 2H] matmul per modality, f32 accumulate.
    vb12 = jnp.maximum(jnp.dot(v16.reshape(rows, Dv), w_v12_ref[...],
                               preferred_element_type=f32), 0.0)
    ab12 = jnp.maximum(jnp.dot(a16.reshape(rows, Da), w_a12_ref[...],
                               preferred_element_type=f32), 0.0)
    vb1 = vb12[:, :H].reshape(Bb, Tv, H)
    vb2 = vb12[:, H:].reshape(Bb, Tv, H)
    ab1 = ab12[:, :H].reshape(Bb, Ta, H)
    ab2 = ab12[:, H:].reshape(Bb, Ta, H)

    inv_sqrt_h = 1.0 / jnp.sqrt(jnp.float32(H))
    vb2_16, ab1_16 = vb2.astype(bf16), ab1.astype(bf16)
    # beta_av == beta_va^T (ReLU commutes with the transpose). Recomputed with
    # a second rhs-transposed (contract-last-dims) MXU contraction -- the
    # natively supported pattern -- instead of an explicit [T,T] transpose or a
    # transposed-lhs dot_general (both have lowering risk; the recompute costs
    # a negligible B*T*T*H MACs at these shapes).
    beta_va = jnp.maximum(jnp.einsum("bvh,bah->bva", vb2_16, ab1_16,
                                     preferred_element_type=f32) * inv_sqrt_h, 0.0)
    beta_av = jnp.maximum(jnp.einsum("bah,bvh->bav", ab1_16, vb2_16,
                                     preferred_element_type=f32) * inv_sqrt_h, 0.0)

    eps = 1e-8
    # Row-normalise, threshold ("positive sample" selection), re-normalise.
    # Pre-threshold normalisation: exact divide (keeps the `> thr` selection
    # identical to the reference). Post-threshold renorm: EUP approx reciprocal.
    bva = beta_va / (jnp.sum(beta_va, axis=-1, keepdims=True) + eps)
    gva = jnp.where(bva > thr, bva, 0.0)
    gva = gva * pl.reciprocal(jnp.sum(gva, axis=-1, keepdims=True) + eps, approx=True)
    bav = beta_av / (jnp.sum(beta_av, axis=-1, keepdims=True) + eps)
    gav = jnp.where(bav > thr, bav, 0.0)
    gav = gav * pl.reciprocal(jnp.sum(gav, axis=-1, keepdims=True) + eps, approx=True)

    # Cross-modal aggregation + residual (residual kept in f32).
    a_pos = jnp.einsum("bva,bah->bvh", gva.astype(bf16), ab2.astype(bf16),
                       preferred_element_type=f32)
    v_psp = v16.astype(f32) + a_pos
    v_pos = jnp.einsum("bav,bvh->bah", gav.astype(bf16), vb1.astype(bf16),
                       preferred_element_type=f32)
    a_psp = a16.astype(f32) + v_pos

    # Output projections + ReLU + LayerNorm (affine = identity).
    v_out = jnp.maximum(jnp.dot(v_psp.reshape(rows, Dv).astype(bf16),
                                w_vfc_ref[...], preferred_element_type=f32), 0.0)
    a_out = jnp.maximum(jnp.dot(a_psp.reshape(rows, Da).astype(bf16),
                                w_afc_ref[...], preferred_element_type=f32), 0.0)
    v_out = _layer_norm(v_out)
    a_out = _layer_norm(a_out)
    fuse = 0.5 * (v_out + a_out)

    # Single lane-dense store: [ fuse | v_psp | a_psp | zero-pad ] to a
    # 128-multiple width, emitted as bf16 with one unmasked full-tile write.
    pad = Wpad - 3 * Do
    parts = [fuse, v_out, a_out]
    if pad:
        parts.append(jnp.zeros((rows, pad), f32))
    slab = jnp.concatenate(parts, axis=-1).astype(out_ref.dtype)
    out_ref[...] = slab.reshape(Bb, Tv, Wpad)


# ------------------------- generation-aware tiling ---------------------------
def _tensorcores_per_chip():
    try:
        kind = jax.devices()[0].device_kind.lower()
    except Exception:
        return 1
    # v7x (and megacore v4 / v5p) expose two TensorCores; v5e / v6e have one.
    if ("v7" in kind) or ("v4" in kind) or ("v5p" in kind):
        return 2
    return 1


def _pick_batch_block(B, T):
    n_tc = _tensorcores_per_chip()
    if n_tc > 1 and B >= 2:
        bb = -(-B // n_tc)      # >= 2 "parallel" grid steps -> both TCs get work
    else:
        bb = B                  # single TC: one big step, no per-step overhead
    # Crude VMEM guard on the per-step row count (f32 intermediates scale with
    # it). Re-derive for v7x's 64 MiB VMEM if T or the feature dims scale up.
    max_rows = 4096
    while bb > 1 and bb * T > max_rows:
        bb //= 2
    bb = max(1, min(bb, B))
    while B % bb:
        bb -= 1
    return bb


# --------------------------------- wrapper ----------------------------------
def psp_forward(a_fea, v_fea, thr_val, params, *, batch_block=None):
    B, Ta, Da = a_fea.shape
    Bv, Tv, Dv = v_fea.shape
    assert B == Bv and Ta == Tv, "PSP requires matching batch and time axes"
    H = params["v_L1"].shape[1]
    Do = params["v_fc"].shape[1]
    Wpad = ((3 * Do + 127) // 128) * 128     # lane-dense packed output width

    # Lane-dense packed weights; bf16 operands (f32 accumulation in-kernel).
    bf16 = jnp.bfloat16
    w_v12 = jnp.concatenate([params["v_L1"], params["v_L2"]], axis=1).astype(bf16)
    w_a12 = jnp.concatenate([params["a_L1"], params["a_L2"]], axis=1).astype(bf16)
    w_vfc = params["v_fc"].astype(bf16)
    w_afc = params["a_fc"].astype(bf16)
    a16 = a_fea.astype(bf16)
    v16 = v_fea.astype(bf16)

    if batch_block is None:
        batch_block = _pick_batch_block(B, Tv)
    batch_block = max(1, min(batch_block, B))
    while B % batch_block:
        batch_block -= 1
    nb = B // batch_block

    thr = jnp.asarray([thr_val], dtype=jnp.float32)

    grid_spec = pltpu.PrefetchScalarGridSpec(
        num_scalar_prefetch=0,
        grid=(nb,),
        in_specs=[
            pl.BlockSpec(memory_space=pltpu.MemorySpace.SMEM),           # thr
            pl.BlockSpec((batch_block, Ta, Da), lambda b: (b, 0, 0)),    # a_fea
            pl.BlockSpec((batch_block, Tv, Dv), lambda b: (b, 0, 0)),    # v_fea
            pl.BlockSpec((Dv, 2 * H), lambda b: (0, 0)),                 # v_L1||v_L2
            pl.BlockSpec((Da, 2 * H), lambda b: (0, 0)),                 # a_L1||a_L2
            pl.BlockSpec((Dv, Do), lambda b: (0, 0)),                    # v_fc
            pl.BlockSpec((Da, Do), lambda b: (0, 0)),                    # a_fc
        ],
        out_specs=pl.BlockSpec((batch_block, Tv, Wpad), lambda b: (b, 0, 0)),
    )

    packed = pl.pallas_call(
        psp_kernel,
        out_shape=jax.ShapeDtypeStruct((B, Tv, Wpad), jnp.bfloat16),
        grid_spec=grid_spec,
        compiler_params=pltpu.CompilerParams(dimension_semantics=("parallel",)),
    )(thr, a16, v16, w_v12, w_a12, w_vfc, w_afc)

    # Split the packed lane-dense slab (cheap XLA slices outside the kernel)
    # and hand f32 back to the caller.
    packed = packed.astype(jnp.float32)
    a_v_fuse = packed[:, :, 0:Do]
    v_psp = packed[:, :, Do:2 * Do]
    a_psp = packed[:, :, 2 * Do:3 * Do]
    return a_v_fuse, v_psp, a_psp


# ------------------------- pure-JAX reference (check) ------------------------
# Mirrors the kernel's mixed precision (bf16 MXU operands, f32 accumulation) so
# the `> thr` selections are made on identical values; semantics match the
# PyTorch module's eval-mode forward.
def psp_reference(a_fea, v_fea, thr, p):
    bf16, f32 = jnp.bfloat16, jnp.float32
    relu = lambda x: jnp.maximum(x, 0.0)
    H = p["v_L1"].shape[1]
    a16, v16 = a_fea.astype(bf16), v_fea.astype(bf16)

    def mm(x, w):
        return jnp.einsum("btd,dh->bth", x.astype(bf16), w.astype(bf16),
                          preferred_element_type=f32)

    vb1, vb2 = relu(mm(v16, p["v_L1"])), relu(mm(v16, p["v_L2"]))
    ab1, ab2 = relu(mm(a16, p["a_L1"])), relu(mm(a16, p["a_L2"]))

    inv_sqrt_h = 1.0 / jnp.sqrt(jnp.float32(H))
    beta_va = relu(jnp.einsum("bvh,bah->bva", vb2.astype(bf16), ab1.astype(bf16),
                              preferred_element_type=f32) * inv_sqrt_h)
    beta_av = relu(jnp.einsum("bah,bvh->bav", ab1.astype(bf16), vb2.astype(bf16),
                              preferred_element_type=f32) * inv_sqrt_h)

    eps = 1e-8
    bva = beta_va / (jnp.sum(beta_va, -1, keepdims=True) + eps)
    gva = jnp.where(bva > thr, bva, 0.0)
    gva = gva / (jnp.sum(gva, -1, keepdims=True) + eps)
    bav = beta_av / (jnp.sum(beta_av, -1, keepdims=True) + eps)
    gav = jnp.where(bav > thr, bav, 0.0)
    gav = gav / (jnp.sum(gav, -1, keepdims=True) + eps)

    a_pos = jnp.einsum("bva,bah->bvh", gva.astype(bf16), ab2.astype(bf16),
                       preferred_element_type=f32)
    v_psp = v16.astype(f32) + a_pos
    v_pos = jnp.einsum("bav,bvh->bah", gav.astype(bf16), vb1.astype(bf16),
                       preferred_element_type=f32)
    a_psp = a16.astype(f32) + v_pos

    v_psp = relu(mm(v_psp, p["v_fc"]))
    a_psp = relu(mm(a_psp, p["a_fc"]))

    def ln(x):
        mu = jnp.mean(x, -1, keepdims=True)
        var = jnp.mean((x - mu) ** 2, -1, keepdims=True)
        return (x - mu) * lax.rsqrt(var + 1e-6)

    v_psp, a_psp = ln(v_psp), ln(a_psp)
    return 0.5 * (v_psp + a_psp), v_psp, a_psp


# ---------------------------------- main -------------------------------------
def _xavier_uniform(key, in_dim, out_dim):
    bound = float(np.sqrt(6.0 / (in_dim + out_dim)))
    return jax.random.uniform(key, (in_dim, out_dim), jnp.float32, -bound, bound)


if __name__ == "__main__":
    # Small shapes consistent with the module: a_dim = v_dim = hidden = out = 32
    B, T, D = 2, 8, 32
    thr_val = 0.05

    key = jax.random.PRNGKey(0)
    k_a, k_v, k1, k2, k3, k4, k5, k6 = jax.random.split(key, 8)

    a_fea = jax.random.normal(k_a, (B, T, D), jnp.float32)
    v_fea = jax.random.normal(k_v, (B, T, D), jnp.float32)

    params = {
        "v_L1": _xavier_uniform(k1, D, D),
        "v_L2": _xavier_uniform(k2, D, D),
        "v_fc": _xavier_uniform(k3, D, D),
        "a_L1": _xavier_uniform(k4, D, D),
        "a_L2": _xavier_uniform(k5, D, D),
        "a_fc": _xavier_uniform(k6, D, D),
    }

    fuse, v_psp, a_psp = psp_forward(a_fea, v_fea, thr_val, params)
    jax.block_until_ready((fuse, v_psp, a_psp))

    ref_fuse, ref_v, ref_a = psp_reference(a_fea, v_fea, thr_val, params)
    np.testing.assert_allclose(np.asarray(fuse), np.asarray(ref_fuse), rtol=2e-2, atol=2e-2)
    np.testing.assert_allclose(np.asarray(v_psp), np.asarray(ref_v), rtol=2e-2, atol=2e-2)
    np.testing.assert_allclose(np.asarray(a_psp), np.asarray(ref_a), rtol=2e-2, atol=2e-2)

    print("KERNEL_OK")
</pallas_src>

<mosaic_0001>
module attributes {stable_mosaic.version = 11 : i64} {
  func.func @psp_kernel(%arg0: i32, %arg1: memref<1xf32, #tpu.memory_space<smem>>, %arg2: memref<2x8x32xbf16, #tpu.memory_space<vmem>>, %arg3: memref<2x8x32xbf16, #tpu.memory_space<vmem>>, %arg4: memref<32x64xbf16, #tpu.memory_space<vmem>>, %arg5: memref<32x64xbf16, #tpu.memory_space<vmem>>, %arg6: memref<32x32xbf16, #tpu.memory_space<vmem>>, %arg7: memref<32x32xbf16, #tpu.memory_space<vmem>>, %arg8: memref<2x8x128xbf16, #tpu.memory_space<vmem>>) attributes {dimension_semantics = [#tpu.dimension_semantics<parallel>], iteration_bounds = array<i64: 1>, scalar_prefetch = 0 : i64, scratch_operands = 0 : i64, tpu.core_type = #tpu.core_type<tc>, window_params = [{transform_indices = @transform_0, window_bounds = array<i64: 1>}, {transform_indices = @transform_1, window_bounds = array<i64: 2, 8, 32>}, {transform_indices = @transform_2, window_bounds = array<i64: 2, 8, 32>}, {pipeline_mode = #tpu.pipeline_mode<synchronous>, transform_indices = @transform_3, window_bounds = array<i64: 32, 64>}, {pipeline_mode = #tpu.pipeline_mode<synchronous>, transform_indices = @transform_4, window_bounds = array<i64: 32, 64>}, {pipeline_mode = #tpu.pipeline_mode<synchronous>, transform_indices = @transform_5, window_bounds = array<i64: 32, 32>}, {pipeline_mode = #tpu.pipeline_mode<synchronous>, transform_indices = @transform_6, window_bounds = array<i64: 32, 32>}, {transform_indices = @transform_7, window_bounds = array<i64: 2, 8, 128>}]} {
    %c0 = arith.constant 0 : index
    %0 = memref.load %arg1[%c0] : memref<1xf32, #tpu.memory_space<smem>>
    %c0_0 = arith.constant 0 : index
    %c0_1 = arith.constant 0 : index
    %c0_2 = arith.constant 0 : index
    %1 = vector.load %arg2[%c0_0, %c0_1, %c0_2] : memref<2x8x32xbf16, #tpu.memory_space<vmem>>, vector<2x8x32xbf16>
    %c0_3 = arith.constant 0 : index
    %c0_4 = arith.constant 0 : index
    %c0_5 = arith.constant 0 : index
    %2 = vector.load %arg3[%c0_3, %c0_4, %c0_5] : memref<2x8x32xbf16, #tpu.memory_space<vmem>>, vector<2x8x32xbf16>
    %3 = vector.shape_cast %2 : vector<2x8x32xbf16> to vector<16x32xbf16>
    %c0_6 = arith.constant 0 : index
    %c0_7 = arith.constant 0 : index
    %4 = vector.load %arg4[%c0_6, %c0_7] : memref<32x64xbf16, #tpu.memory_space<vmem>>, vector<32x64xbf16>
    %cst = arith.constant dense<0.000000e+00> : vector<16x64xf32>
    %5 = tpu.matmul %3, %4, %cst {dimension_numbers = #tpu.dot_dimension_numbers<[1], [0], [0], [1], [0, 0, 1, 1], [], []>} : vector<16x32xbf16>, vector<32x64xbf16>, vector<16x64xf32> -> vector<16x64xf32>
    %cst_8 = arith.constant 0.000000e+00 : f32
    %6 = vector.broadcast %cst_8 : f32 to vector<16x64xf32>
    %7 = arith.maximumf %5, %6 : vector<16x64xf32>
    %8 = vector.shape_cast %1 : vector<2x8x32xbf16> to vector<16x32xbf16>
    %c0_9 = arith.constant 0 : index
    %c0_10 = arith.constant 0 : index
    %9 = vector.load %arg5[%c0_9, %c0_10] : memref<32x64xbf16, #tpu.memory_space<vmem>>, vector<32x64xbf16>
    %cst_11 = arith.constant dense<0.000000e+00> : vector<16x64xf32>
    %10 = tpu.matmul %8, %9, %cst_11 {dimension_numbers = #tpu.dot_dimension_numbers<[1], [0], [0], [1], [0, 0, 1, 1], [], []>} : vector<16x32xbf16>, vector<32x64xbf16>, vector<16x64xf32> -> vector<16x64xf32>
    %cst_12 = arith.constant 0.000000e+00 : f32
    %11 = vector.broadcast %cst_12 : f32 to vector<16x64xf32>
    %12 = arith.maximumf %10, %11 : vector<16x64xf32>
    %13 = vector.extract_strided_slice %7 {offsets = [0, 0], sizes = [16, 32], strides = [1, 1]} : vector<16x64xf32> to vector<16x32xf32>
    %14 = vector.shape_cast %13 : vector<16x32xf32> to vector<2x8x32xf32>
    %15 = vector.extract_strided_slice %7 {offsets = [0, 32], sizes = [16, 32], strides = [1, 1]} : vector<16x64xf32> to vector<16x32xf32>
    %16 = vector.shape_cast %15 : vector<16x32xf32> to vector<2x8x32xf32>
    %17 = vector.extract_strided_slice %12 {offsets = [0, 0], sizes = [16, 32], strides = [1, 1]} : vector<16x64xf32> to vector<16x32xf32>
    %18 = vector.shape_cast %17 : vector<16x32xf32> to vector<2x8x32xf32>
    %19 = vector.extract_strided_slice %12 {offsets = [0, 32], sizes = [16, 32], strides = [1, 1]} : vector<16x64xf32> to vector<16x32xf32>
    %20 = vector.shape_cast %19 : vector<16x32xf32> to vector<2x8x32xf32>
    %cst_13 = arith.constant 3.200000e+01 : f32
    %21 = math.sqrt %cst_13 : f32
    %cst_14 = arith.constant 1.000000e+00 : f32
    %22 = arith.divf %cst_14, %21 : f32
    %23 = arith.truncf %16 : vector<2x8x32xf32> to vector<2x8x32xbf16>
    %24 = arith.truncf %18 : vector<2x8x32xf32> to vector<2x8x32xbf16>
    "tpu.trace_start"() <{level = 10 : i32, message = "bvh,bah->bva"}> : () -> ()
    %cst_15 = arith.constant dense<0.000000e+00> : vector<2x8x8xf32>
    %25 = tpu.matmul %23, %24, %cst_15 {dimension_numbers = #tpu.dot_dimension_numbers<[2], [2], [1], [1], [0, 0, 0, 1, 1, 1], [0], [0]>} : vector<2x8x32xbf16>, vector<2x8x32xbf16>, vector<2x8x8xf32> -> vector<2x8x8xf32>
    "tpu.trace_stop"() : () -> ()
    %26 = vector.broadcast %22 : f32 to vector<2x8x8xf32>
    %27 = arith.mulf %25, %26 : vector<2x8x8xf32>
    %cst_16 = arith.constant 0.000000e+00 : f32
    %28 = vector.broadcast %cst_16 : f32 to vector<2x8x8xf32>
    %29 = arith.maximumf %27, %28 : vector<2x8x8xf32>
    "tpu.trace_start"() <{level = 10 : i32, message = "bah,bvh->bav"}> : () -> ()
    %cst_17 = arith.constant dense<0.000000e+00> : vector<2x8x8xf32>
    %30 = tpu.matmul %24, %23, %cst_17 {dimension_numbers = #tpu.dot_dimension_numbers<[2], [2], [1], [1], [0, 0, 0, 1, 1, 1], [0], [0]>} : vector<2x8x32xbf16>, vector<2x8x32xbf16>, vector<2x8x8xf32> -> vector<2x8x8xf32>
    "tpu.trace_stop"() : () -> ()
    %31 = vector.broadcast %22 : f32 to vector<2x8x8xf32>
    %32 = arith.mulf %30, %31 : vector<2x8x8xf32>
    %cst_18 = arith.constant 0.000000e+00 : f32
    %33 = vector.broadcast %cst_18 : f32 to vector<2x8x8xf32>
    %34 = arith.maximumf %32, %33 : vector<2x8x8xf32>
    %cst_19 = arith.constant dense<0.000000e+00> : vector<2x8xf32>
    %35 = vector.multi_reduction <add>, %29, %cst_19 [2] : vector<2x8x8xf32> to vector<2x8xf32>
    %36 = vector.shape_cast %35 : vector<2x8xf32> to vector<2x8x1xf32>
    %cst_20 = arith.constant 9.99999993E-9 : f32
    %37 = vector.broadcast %cst_20 : f32 to vector<2x8x1xf32>
    %38 = arith.addf %36, %37 : vector<2x8x1xf32>
    %39 = vector.broadcast %38 : vector<2x8x1xf32> to vector<2x8x8xf32>
    %40 = arith.divf %29, %39 : vector<2x8x8xf32>
    %41 = vector.broadcast %0 : f32 to vector<2x8x8xf32>
    %42 = arith.cmpf ogt, %40, %41 : vector<2x8x8xf32>
    %cst_21 = arith.constant 0.000000e+00 : f32
    %43 = vector.broadcast %cst_21 : f32 to vector<2x8x8xf32>
    %44 = arith.select %42, %40, %43 : vector<2x8x8xi1>, vector<2x8x8xf32>
    %cst_22 = arith.constant dense<0.000000e+00> : vector<2x8xf32>
    %45 = vector.multi_reduction <add>, %44, %cst_22 [2] : vector<2x8x8xf32> to vector<2x8xf32>
    %46 = vector.shape_cast %45 : vector<2x8xf32> to vector<2x8x1xf32>
    %cst_23 = arith.constant 9.99999993E-9 : f32
    %47 = vector.broadcast %cst_23 : f32 to vector<2x8x1xf32>
    %48 = arith.addf %46, %47 : vector<2x8x1xf32>
    %49 = tpu.reciprocal %48 {approx = true} : vector<2x8x1xf32> -> vector<2x8x1xf32>
    %50 = vector.broadcast %49 : vector<2x8x1xf32> to vector<2x8x8xf32>
    %51 = arith.mulf %44, %50 : vector<2x8x8xf32>
    %cst_24 = arith.constant dense<0.000000e+00> : vector<2x8xf32>
    %52 = vector.multi_reduction <add>, %34, %cst_24 [2] : vector<2x8x8xf32> to vector<2x8xf32>
    %53 = vector.shape_cast %52 : vector<2x8xf32> to vector<2x8x1xf32>
    %cst_25 = arith.constant 9.99999993E-9 : f32
    %54 = vector.broadcast %cst_25 : f32 to vector<2x8x1xf32>
    %55 = arith.addf %53, %54 : vector<2x8x1xf32>
    %56 = vector.broadcast %55 : vector<2x8x1xf32> to vector<2x8x8xf32>
    %57 = arith.divf %34, %56 : vector<2x8x8xf32>
    %58 = vector.broadcast %0 : f32 to vector<2x8x8xf32>
    %59 = arith.cmpf ogt, %57, %58 : vector<2x8x8xf32>
    %cst_26 = arith.constant 0.000000e+00 : f32
    %60 = vector.broadcast %cst_26 : f32 to vector<2x8x8xf32>
    %61 = arith.select %59, %57, %60 : vector<2x8x8xi1>, vector<2x8x8xf32>
    %cst_27 = arith.constant dense<0.000000e+00> : vector<2x8xf32>
    %62 = vector.multi_reduction <add>, %61, %cst_27 [2] : vector<2x8x8xf32> to vector<2x8xf32>
    %63 = vector.shape_cast %62 : vector<2x8xf32> to vector<2x8x1xf32>
    %cst_28 = arith.constant 9.99999993E-9 : f32
    %64 = vector.broadcast %cst_28 : f32 to vector<2x8x1xf32>
    %65 = arith.addf %63, %64 : vector<2x8x1xf32>
    %66 = tpu.reciprocal %65 {approx = true} : vector<2x8x1xf32> -> vector<2x8x1xf32>
    %67 = vector.broadcast %66 : vector<2x8x1xf32> to vector<2x8x8xf32>
    %68 = arith.mulf %61, %67 : vector<2x8x8xf32>
    %69 = arith.truncf %51 : vector<2x8x8xf32> to vector<2x8x8xbf16>
    %70 = arith.truncf %20 : vector<2x8x32xf32> to vector<2x8x32xbf16>
    "tpu.trace_start"() <{level = 10 : i32, message = "bva,bah->bvh"}> : () -> ()
    %cst_29 = arith.constant dense<0.000000e+00> : vector<2x8x32xf32>
    %71 = tpu.matmul %69, %70, %cst_29 {dimension_numbers = #tpu.dot_dimension_numbers<[2], [1], [1], [2], [0, 0, 0, 1, 1, 2], [0], [0]>} : vector<2x8x8xbf16>, vector<2x8x32xbf16>, vector<2x8x32xf32> -> vector<2x8x32xf32>
    "tpu.trace_stop"() : () -> ()
    %72 = arith.extf %2 : vector<2x8x32xbf16> to vector<2x8x32xf32>
    %73 = arith.addf %72, %71 : vector<2x8x32xf32>
    %74 = arith.truncf %68 : vector<2x8x8xf32> to vector<2x8x8xbf16>
    %75 = arith.truncf %14 : vector<2x8x32xf32> to vector<2x8x32xbf16>
    "tpu.trace_start"() <{level = 10 : i32, message = "bav,bvh->bah"}> : () -> ()
    %cst_30 = arith.constant dense<0.000000e+00> : vector<2x8x32xf32>
    %76 = tpu.matmul %74, %75, %cst_30 {dimension_numbers = #tpu.dot_dimension_numbers<[2], [1], [1], [2], [0, 0, 0, 1, 1, 2], [0], [0]>} : vector<2x8x8xbf16>, vector<2x8x32xbf16>, vector<2x8x32xf32> -> vector<2x8x32xf32>
    "tpu.trace_stop"() : () -> ()
    %77 = arith.extf %1 : vector<2x8x32xbf16> to vector<2x8x32xf32>
    %78 = arith.addf %77, %76 : vector<2x8x32xf32>
    %79 = vector.shape_cast %73 : vector<2x8x32xf32> to vector<16x32xf32>
    %80 = arith.truncf %79 : vector<16x32xf32> to vector<16x32xbf16>
    %c0_31 = arith.constant 0 : index
    %c0_32 = arith.constant 0 : index
    %81 = vector.load %arg6[%c0_31, %c0_32] : memref<32x32xbf16, #tpu.memory_space<vmem>>, vector<32x32xbf16>
    %cst_33 = arith.constant dense<0.000000e+00> : vector<16x32xf32>
    %82 = tpu.matmul %80, %81, %cst_33 {dimension_numbers = #tpu.dot_dimension_numbers<[1], [0], [0], [1], [0, 0, 1, 1], [], []>} : vector<16x32xbf16>, vector<32x32xbf16>, vector<16x32xf32> -> vector<16x32xf32>
    %cst_34 = arith.constant 0.000000e+00 : f32
    %83 = vector.broadcast %cst_34 : f32 to vector<16x32xf32>
    %84 = arith.maximumf %82, %83 : vector<16x32xf32>
    %85 = vector.shape_cast %78 : vector<2x8x32xf32> to vector<16x32xf32>
    %86 = arith.truncf %85 : vector<16x32xf32> to vector<16x32xbf16>
    %c0_35 = arith.constant 0 : index
    %c0_36 = arith.constant 0 : index
    %87 = vector.load %arg7[%c0_35, %c0_36] : memref<32x32xbf16, #tpu.memory_space<vmem>>, vector<32x32xbf16>
    %cst_37 = arith.constant dense<0.000000e+00> : vector<16x32xf32>
    %88 = tpu.matmul %86, %87, %cst_37 {dimension_numbers = #tpu.dot_dimension_numbers<[1], [0], [0], [1], [0, 0, 1, 1], [], []>} : vector<16x32xbf16>, vector<32x32xbf16>, vector<16x32xf32> -> vector<16x32xf32>
    %cst_38 = arith.constant 0.000000e+00 : f32
    %89 = vector.broadcast %cst_38 : f32 to vector<16x32xf32>
    %90 = arith.maximumf %88, %89 : vector<16x32xf32>
    %cst_39 = arith.constant dense<0.000000e+00> : vector<16xf32>
    %91 = vector.multi_reduction <add>, %84, %cst_39 [1] : vector<16x32xf32> to vector<16xf32>
    %92 = vector.shape_cast %91 : vector<16xf32> to vector<16x1xf32>
    %cst_40 = arith.constant 3.200000e+01 : f32
    %93 = vector.broadcast %cst_40 : f32 to vector<16x1xf32>
    %94 = arith.divf %92, %93 : vector<16x1xf32>
    %95 = vector.broadcast %94 : vector<16x1xf32> to vector<16x32xf32>
    %96 = arith.subf %84, %95 : vector<16x32xf32>
    %97 = arith.mulf %96, %96 : vector<16x32xf32>
    %cst_41 = arith.constant dense<0.000000e+00> : vector<16xf32>
    %98 = vector.multi_reduction <add>, %97, %cst_41 [1] : vector<16x32xf32> to vector<16xf32>
    %99 = vector.shape_cast %98 : vector<16xf32> to vector<16x1xf32>
    %cst_42 = arith.constant 3.200000e+01 : f32
    %100 = vector.broadcast %cst_42 : f32 to vector<16x1xf32>
    %101 = arith.divf %99, %100 : vector<16x1xf32>
    %102 = vector.broadcast %94 : vector<16x1xf32> to vector<16x32xf32>
    %103 = arith.subf %84, %102 : vector<16x32xf32>
    %cst_43 = arith.constant 9.99999997E-7 : f32
    %104 = vector.broadcast %cst_43 : f32 to vector<16x1xf32>
    %105 = arith.addf %101, %104 : vector<16x1xf32>
    %106 = math.rsqrt %105 : vector<16x1xf32>
    %107 = vector.broadcast %106 : vector<16x1xf32> to vector<16x32xf32>
    %108 = arith.mulf %103, %107 : vector<16x32xf32>
    %cst_44 = arith.constant dense<0.000000e+00> : vector<16xf32>
    %109 = vector.multi_reduction <add>, %90, %cst_44 [1] : vector<16x32xf32> to vector<16xf32>
    %110 = vector.shape_cast %109 : vector<16xf32> to vector<16x1xf32>
    %cst_45 = arith.constant 3.200000e+01 : f32
    %111 = vector.broadcast %cst_45 : f32 to vector<16x1xf32>
    %112 = arith.divf %110, %111 : vector<16x1xf32>
    %113 = vector.broadcast %112 : vector<16x1xf32> to vector<16x32xf32>
    %114 = arith.subf %90, %113 : vector<16x32xf32>
    %115 = arith.mulf %114, %114 : vector<16x32xf32>
    %cst_46 = arith.constant dense<0.000000e+00> : vector<16xf32>
    %116 = vector.multi_reduction <add>, %115, %cst_46 [1] : vector<16x32xf32> to vector<16xf32>
    %117 = vector.shape_cast %116 : vector<16xf32> to vector<16x1xf32>
    %cst_47 = arith.constant 3.200000e+01 : f32
    %118 = vector.broadcast %cst_47 : f32 to vector<16x1xf32>
    %119 = arith.divf %117, %118 : vector<16x1xf32>
    %120 = vector.broadcast %112 : vector<16x1xf32> to vector<16x32xf32>
    %121 = arith.subf %90, %120 : vector<16x32xf32>
    %cst_48 = arith.constant 9.99999997E-7 : f32
    %122 = vector.broadcast %cst_48 : f32 to vector<16x1xf32>
    %123 = arith.addf %119, %122 : vector<16x1xf32>
    %124 = math.rsqrt %123 : vector<16x1xf32>
    %125 = vector.broadcast %124 : vector<16x1xf32> to vector<16x32xf32>
    %126 = arith.mulf %121, %125 : vector<16x32xf32>
    %127 = arith.addf %108, %126 : vector<16x32xf32>
    %cst_49 = arith.constant 5.000000e-01 : f32
    %128 = vector.broadcast %cst_49 : f32 to vector<16x32xf32>
    %129 = arith.mulf %128, %127 : vector<16x32xf32>
    %cst_50 = arith.constant 0.000000e+00 : f32
    %130 = vector.broadcast %cst_50 : f32 to vector<16x32xf32>
    %131 = tpu.concatenate %129, %108, %126, %130 in 1 : vector<16x32xf32>, vector<16x32xf32>, vector<16x32xf32>, vector<16x32xf32> -> vector<16x128xf32>
    %132 = arith.truncf %131 : vector<16x128xf32> to vector<16x128xbf16>
    %133 = vector.shape_cast %132 : vector<16x128xbf16> to vector<2x8x128xbf16>
    %c0_51 = arith.constant 0 : index
    %c0_52 = arith.constant 0 : index
    %c0_53 = arith.constant 0 : index
    %134 = vector.load %arg8[%c0_51, %c0_52, %c0_53] : memref<2x8x128xbf16, #tpu.memory_space<vmem>>, vector<2x8x128xbf16>
    tpu.vector_store %arg8[%c0_51, %c0_52, %c0_53], %133 {strides = array<i32>} : memref<2x8x128xbf16, #tpu.memory_space<vmem>>, vector<2x8x128xbf16>,
    return
  }
  func.func @transform_0(%arg0: i32) -> i32 {
    %c0_i32 = arith.constant 0 : i32
    %c0_i32_0 = arith.constant 0 : i32
    return %c0_i32 : i32
  }
  func.func @transform_1(%arg0: i32) -> (i32, i32, i32) {
    %c0_i32 = arith.constant 0 : i32
    %c0_i32_0 = arith.constant 0 : i32
    %c0_i32_1 = arith.constant 0 : i32
    return %arg0, %c0_i32, %c0_i32_0 : i32, i32, i32
  }
  func.func @transform_2(%arg0: i32) -> (i32, i32, i32) {
    %c0_i32 = arith.constant 0 : i32
    %c0_i32_0 = arith.constant 0 : i32
    %c0_i32_1 = arith.constant 0 : i32
    return %arg0, %c0_i32, %c0_i32_0 : i32, i32, i32
  }
  func.func @transform_3(%arg0: i32) -> (i32, i32) {
    %c0_i32 = arith.constant 0 : i32
    %c0_i32_0 = arith.constant 0 : i32
    %c0_i32_1 = arith.constant 0 : i32
    return %c0_i32, %c0_i32_0 : i32, i32
  }
  func.func @transform_4(%arg0: i32) -> (i32, i32) {
    %c0_i32 = arith.constant 0 : i32
    %c0_i32_0 = arith.constant 0 : i32
    %c0_i32_1 = arith.constant 0 : i32
    return %c0_i32, %c0_i32_0 : i32, i32
  }
  func.func @transform_5(%arg0: i32) -> (i32, i32) {
    %c0_i32 = arith.constant 0 : i32
    %c0_i32_0 = arith.constant 0 : i32
    %c0_i32_1 = arith.constant 0 : i32
    return %c0_i32, %c0_i32_0 : i32, i32
  }
  func.func @transform_6(%arg0: i32) -> (i32, i32) {
    %c0_i32 = arith.constant 0 : i32
    %c0_i32_0 = arith.constant 0 : i32
    %c0_i32_1 = arith.constant 0 : i32
    return %c0_i32, %c0_i32_0 : i32, i32
  }
  func.func @transform_7(%arg0: i32) -> (i32, i32, i32) {
    %c0_i32 = arith.constant 0 : i32
    %c0_i32_0 = arith.constant 0 : i32
    %c0_i32_1 = arith.constant 0 : i32
    return %arg0, %c0_i32, %c0_i32_0 : i32, i32, i32
  }
}

</mosaic_0001>

<bundles_post_ra>
// kernel: tpu_custom_call.1
= control target key start
LH: loop header
LB: loop body
LE: loop exit
PB: predicated region body
PF: predicated region fallthrough
CT: control target
= control target key end

     0   :  { %13 = vsyncpa [#allocation4], 0  ;;  %s1532_s0 = inlined_call_operand.<no memory space> [shape: f32[1], index: 0, kind: input, shape index: {}]   ;;  %s1533_s1 = inlined_call_operand.hbm [shape: bf16[2,8,32], index: 1, kind: input, shape index: {}]   ;;  %s1534_s2 = inlined_call_operand.hbm [shape: bf16[2,8,32], index: 2, kind: input, shape index: {}]   ;;  %s1535_s3 = inlined_call_operand.hbm [shape: bf16[32,64], index: 3, kind: input, shape index: {}]   ;;  %s1536_s4 = inlined_call_operand.hbm [shape: bf16[32,64], index: 4, kind: input, shape index: {}]   ;;  %s1537_s5 = inlined_call_operand.vmem [shape: bf16[32,32], index: 5, kind: input, shape index: {}]   ;;  %s1538_s6 = inlined_call_operand.hbm [shape: bf16[32,32], index: 6, kind: input, shape index: {}]   ;;  %s1539_s7 = inlined_call_operand.hbm [shape: bf16[2,8,128], index: 7, kind: output, shape index: {}]  }
   0x1   :  { %14 = vsyncpa [#allocation7], 0 }
   0x2   :  { %15 = vsyncpa [#allocation10], 0 }
   0x3   :  { %16 = vsyncpa [#allocation5], 0  ;;  %s1261_s24 = smov [#allocation6]   ;;  %s1262_s26 = smov [#allocation9]  }
   0x4   :  { %s36_s25 = sshll.u32 %s1261_s24, 4  ;;  %s60_s27 = sshll.u32 %s1262_s26, 4  ;;  %s37_s25 = int_to_ptr.vmem [resolvable:$true] %s36_s25  ;;  %s1313_s27 = int_to_ptr.vmem [resolvable:$true] %s60_s27 }
   0x5   :  { %s1121_s30 = scalar_lea.hbm %s1534_s2, 128 }
   0x6   :  { %p1122_p0 = scmp.ne.s32.totalorder %s1534_s2, %s1121_s30  ;;  %p1125_p1 = scmp.lt.u32.totalorder %s1121_s30, %s1534_s2 }
   0x8   :  { %p1127_p2 = pnand %p1125_p1, %p1122_p0 }
   0xa   :  { %1130 = shalt.err (!%p1127_p2)
}
   0xb   :  { %s1131_s12 = scalar_lea.vmem %s37_s25, 128  ;;  %p1136_p4 = scmp.lt.s32.totalorder %s37_s25, %s37_s25 }
   0xc   :  { %p1132_p3 = scmp.ne.s32.totalorder %s37_s25, %s1131_s12  ;;  %p1137_p5 = scmp.lt.s32.totalorder %s1131_s12, %s1131_s12 }
   0xe   :  { %p1138_p6 = por %p1137_p5, %p1136_p4 }
  0x10   :  { %p1139_p7 = pnand %p1138_p6, %p1132_p3 }
  0x12   :  { %1142 = shalt.err (!%p1139_p7)
}
  0x13   :  { %s1263_s13 = smov 64   ;;  %s1264_s14 = smov 4  }
  0x14   :  { %42 = dma.hbm_to_vmem [thread:$0]  %s1534_s2, 128, %s37_s25, [#allocation7], %s1263_s13, %s1263_s13, %s1264_s14  }
  0x15   :  { %s1143_s19 = scalar_lea.hbm %s1536_s4, 256 }
  0x16   :  { %p1144_p8 = scmp.ne.s32.totalorder %s1536_s4, %s1143_s19  ;;  %p1147_p9 = scmp.lt.u32.totalorder %s1143_s19, %s1536_s4 }
  0x18   :  { %p1149_p10 = pnand %p1147_p9, %p1144_p8 }
  0x1a   :  { %1152 = shalt.err (!%p1149_p10)
}
  0x1b   :  { %s1153_s24 = scalar_lea.vmem %s1313_s27, 256  ;;  %p1158_p12 = scmp.lt.s32.totalorder %s1313_s27, %s1313_s27 }
  0x1c   :  { %p1154_p11 = scmp.ne.s32.totalorder %s1313_s27, %s1153_s24  ;;  %p1159_p13 = scmp.lt.s32.totalorder %s1153_s24, %s1153_s24 }
  0x1e   :  { %p1160_p0 = por %p1159_p13, %p1158_p12 }
  0x20   :  { %p1161_p1 = pnand %p1160_p0, %p1154_p11 }
  0x22   :  { %1164 = shalt.err (!%p1161_p1)
}
  0x23   :  { %66 = dma.hbm_to_vmem [thread:$0]  %s1536_s4, 256, %s1313_s27, [#allocation10], %s1263_s13, %s1263_s13, %s1264_s14  }
  0x24   :  { %s1265_s26 = smov [#allocation3]   ;;  %s1266_s29 = smov [#allocation8]  }
  0x25   :  { %s24_s28 = sshll.u32 %s1265_s26, 4  ;;  %s48_s30 = sshll.u32 %s1266_s29, 4  ;;  %s25_s28 = int_to_ptr.vmem [resolvable:$true] %s24_s28  ;;  %s1350_s30 = int_to_ptr.vmem [resolvable:$true] %s48_s30 }
  0x26   :  { %s1165_s10 = scalar_lea.hbm %s1533_s1, 128 }
  0x27   :  { %p1166_p2 = scmp.ne.s32.totalorder %s1533_s1, %s1165_s10  ;;  %p1169_p3 = scmp.lt.u32.totalorder %s1165_s10, %s1533_s1 }
  0x29   :  { %p1171_p4 = pnand %p1169_p3, %p1166_p2 }
  0x2b   :  { %1174 = shalt.err (!%p1171_p4)
}
  0x2c   :  { %s1175_s4 = scalar_lea.vmem %s25_s28, 128  ;;  %p1180_p6 = scmp.lt.s32.totalorder %s25_s28, %s25_s28 }
  0x2d   :  { %p1176_p5 = scmp.ne.s32.totalorder %s25_s28, %s1175_s4  ;;  %p1181_p7 = scmp.lt.s32.totalorder %s1175_s4, %s1175_s4 }
  0x2f   :  { %p1182_p8 = por %p1181_p7, %p1180_p6 }
  0x31   :  { %p1183_p9 = pnand %p1182_p8, %p1176_p5 }
  0x33   :  { %1186 = shalt.err (!%p1183_p9)
}
  0x34   :  { %30 = dma.hbm_to_vmem [thread:$0]  %s1533_s1, 128, %s25_s28, [#allocation4], %s1263_s13, %s1263_s13, %s1264_s14  }
  0x35   :  { %s1187_s20 = scalar_lea.hbm %s1535_s3, 256 }
  0x36   :  { %p1188_p10 = scmp.ne.s32.totalorder %s1535_s3, %s1187_s20  ;;  %p1191_p11 = scmp.lt.u32.totalorder %s1187_s20, %s1535_s3 }
  0x38   :  { %p1193_p12 = pnand %p1191_p11, %p1188_p10 }
  0x3a   :  { %1196 = shalt.err (!%p1193_p12)
}
  0x3b   :  { %s1197_s2 = scalar_lea.vmem %s1350_s30, 256  ;;  %p1202_p0 = scmp.lt.s32.totalorder %s1350_s30, %s1350_s30 }
  0x3c   :  { %p1198_p13 = scmp.ne.s32.totalorder %s1350_s30, %s1197_s2  ;;  %p1203_p1 = scmp.lt.s32.totalorder %s1197_s2, %s1197_s2 }
  0x3e   :  { %p1204_p2 = por %p1203_p1, %p1202_p0 }
  0x40   :  { %p1205_p3 = pnand %p1204_p2, %p1198_p13 }
  0x42   :  { %1208 = shalt.err (!%p1205_p3)
}
  0x43   :  { %54 = dma.hbm_to_vmem [thread:$0]  %s1535_s3, 256, %s1350_s30, [#allocation7], %s1263_s13, %s1263_s13, %s1264_s14  }
  0x44   :  { %s1267_s26 = smov [#allocation11]   ;;  %s1209_s9 = scalar_lea.hbm %s1538_s6, 256 }
  0x45   :  { %s74_s28 = sshll.u32 %s1267_s26, 4  ;;  %p1210_p4 = scmp.ne.s32.totalorder %s1538_s6, %s1209_s9  ;;  %s75_s28 = int_to_ptr.vmem [resolvable:$true] %s74_s28 }
  0x46   :  { %p1213_p5 = scmp.lt.u32.totalorder %s1209_s9, %s1538_s6 }
  0x48   :  { %p1215_p6 = pnand %p1213_p5, %p1210_p4 }
  0x4a   :  { %1218 = shalt.err (!%p1215_p6)
}
  0x4b   :  { %s1219_s16 = scalar_lea.vmem %s75_s28, 256  ;;  %p1224_p8 = scmp.lt.s32.totalorder %s75_s28, %s75_s28 }
  0x4c   :  { %p1220_p7 = scmp.ne.s32.totalorder %s75_s28, %s1219_s16  ;;  %p1225_p9 = scmp.lt.s32.totalorder %s1219_s16, %s1219_s16 }
  0x4e   :  { %p1226_p10 = por %p1225_p9, %p1224_p8 }
  0x50   :  { %p1227_p11 = pnand %p1226_p10, %p1220_p7 }
  0x52   :  { %1230 = shalt.err (!%p1227_p11)
}
  0x53   :  { %80 = dma.hbm_to_vmem [thread:$0]  %s1538_s6, 256, %s75_s28, [#allocation10], %s1263_s13, %s1263_s13, %s1264_s14  }
  0x54   :  { %1253 = dma.done.wait [#allocation4], 128  }
  0x55   :  { %1254 = vsyncadd [#allocation4], 4294967168 }
  0x56   :  { %1255 = dma.done.wait [#allocation7], 384  }
  0x57   :  { %1256 = vsyncadd [#allocation7], 4294966912 }
  0x58   :  { %1257 = dma.done.wait [#allocation10], 512  }
  0x59   :  { %1258 = vsyncadd [#allocation10], 4294966784  ;;  %v1268_v0 = vmov 0.0   ;;  %vm1269_vm0 = vmmov 0   ;;  %v1085_v1 = vld [vmem:[#allocation8] sm:$0xff]   ;;  %v1086_v2 = vld [vmem:[#allocation8 + $0x8] sm:$0xff]  }
  0x5a   :  { %983 = vmatprep.subr.bf16.mxu0 %v1268_v0  ;;  %987 = vmatprep.mubr.msk.bf16.mxu0 %vm1269_vm0, %v1268_v0  ;;  %v1408_v3 = vld [vmem:[#allocation6] sm:$0xff]   ;;  %v1088_v4 = vld [vmem:[#allocation9] sm:$0xff]   ;;  %vm123_vm1 = vcmask 261120   ;;  %s1270_s6 = smov 96   ;;  %vm427_vm2 = vcmask 64512   ;;  %vm493_vm3 = vcmask 1043456  }
  0x5b   :  { %991 = vmatprep.subr.bf16.mxu1 %v1268_v0  ;;  %995 = vmatprep.mubr.msk.bf16.mxu1 %vm1269_vm0, %v1268_v0  ;;  %v1089_v5 = vld [vmem:[#allocation9 + $0x8] sm:$0xff]   ;;  %v1411_v6 = vld [vmem:[#allocation3] sm:$0xff]   ;;  %vm889_vm8 = vcmask 523264   ;;  %vm892_vm9 = vcmask 785408   ;;  %s1272_s20 = smov [#allocation12]  }
  0x5c   :  { %984 = vmatpush3.bf16.msra.mxu0 %v1085_v1  ;;  %992 = vmatpush3.bf16.msra.mxu1 %v1088_v4  ;;  %s910_s21 = sshll.u32 %s1272_s20, 4  ;;  %s911_s21 = int_to_ptr.vmem [resolvable:$true] %s910_s21 }
  0x5d   :  { %985 = vmatprep.subr.bf16.mxu0 %v1268_v0  ;;  %993 = vmatprep.subr.bf16.mxu1 %v1268_v0  ;;  %s1231_s22 = scalar_lea.vmem %s911_s21, 128  ;;  %p1236_p13 = scmp.lt.s32.totalorder %s911_s21, %s911_s21 }
  0x5e   :  { %p1232_p12 = scmp.ne.s32.totalorder %s911_s21, %s1231_s22  ;;  %p1237_p0 = scmp.lt.s32.totalorder %s1231_s22, %s1231_s22 }
  0x60   :  { %986 = vmatpush3.bf16.msra.mxu0 %v1086_v2  ;;  %994 = vmatpush3.bf16.msra.mxu1 %v1089_v5  ;;  %p1238_p1 = por %p1237_p0, %p1236_p13 }
  0x61   :  { %999 = vmatprep.subr.bf16.mxu0 %v1268_v0  ;;  %1005 = vmatprep.subr.bf16.mxu1 %v1268_v0 }
  0x62   :  { %p1239_p2 = pnand %p1238_p1, %p1232_p12 }
  0x63   :  { %988 = vmatmul.mubr.msk.bf16.vlgmr.msra.gmra.mrb[0].mxu0 %vm123_vm1, %v1408_v3  ;;  %996 = vmatmul.mubr.msk.bf16.vlgmr.msra.gmra.mrb[0].mxu1 %vm123_vm1, %v1411_v6 }
  0x64   :  { %1001 = vmatprep.mubr.msk.bf16.mxu0 %vm1269_vm0, %v1268_v0  ;;  %1007 = vmatprep.mubr.msk.bf16.mxu1 %vm1269_vm0, %v1268_v0 }
 0x136   :  { %v161_v7 = vpop.f32.mrb[0].mxu0  ;;  %v228_v14 = vpop.f32.mrb[0].mxu1 }
 0x137   :  { %v168_v8 = vmax.f32 %v161_v7, 0.0  ;;  %v989_v9 = vpop.f32.mrb[1].mxu0  ;;  %v235_v15 = vmax.f32 %v228_v14, 0.0  ;;  %v997_v16 = vpop.f32.mrb[1].mxu1  ;;  %v440_v7 = vstv %s1532_s0 }
 0x138   :  { %v164_v10 = vpop.f32.mrb[2].mxu0  ;;  %v231_v17 = vpop.f32.mrb[2].mxu1 }
 0x139   :  { %v1424_v11 = vpack.c.bf16 %v168_v8, %v168_v8  ;;  %v169_v12 = vmax.f32 %v164_v10, 0.0  ;;  %v990_v13 = vpop.f32.mrb[3].mxu0  ;;  %v1428_v18 = vpack.c.bf16 %v235_v15, %v235_v15  ;;  %v236_v19 = vmax.f32 %v231_v17, 0.0  ;;  %v998_v20 = vpop.f32.mrb[3].mxu1 }
 0x13b   :  { %242 = vrot.lane.b32.xlu0 %v1424_v11, %s1270_s6  ;;  %v1430_v21 = vpack.c.bf16 %v169_v12, %v169_v12  ;;  %v240_v22 = vpack.c.bf16 %v236_v19, %v236_v19  ;;  %v248_v23 = vsel %vm123_vm1, %v1428_v18, 0 }
 0x13c   :  { %1000 = vmatpush3.bf16.xpose.msra.mxu0 %v248_v23 }
 0x13d   :  { %v297_v24 = vsel %vm123_vm1, %v240_v22, 0  ;;  %1011 = vmatprep.subr.bf16.mxu0 %v1268_v0 }
 0x13e   :  { %1006 = vmatpush3.bf16.xpose.msra.mxu1 %v297_v24 }
 0x13f   :  { %291 = vrot.lane.b32.xlu0 %v1430_v21, %s1270_s6  ;;  %1017 = vmatprep.subr.bf16.mxu1 %v1268_v0 }
 0x1ad   :  { %v243_v25 = vpop.permute.xlu0 %242 }
 0x1ae   :  { %v245_v26 = vsel %vm123_vm1, %v243_v25, 0  ;;  %1002 = vmatmul.mubr.msk.bf16.vlgmr.msra.gmra.mrb[4].mxu0 %vm123_vm1, %v243_v25 }
 0x1af   :  { %1012 = vmatpush3.bf16.xpose.msra.mxu0 %v245_v26  ;;  %1013 = vmatprep.mubr.msk.bf16.mxu0 %vm1269_vm0, %v1268_v0 }
 0x1b0   :  { %1023 = vmatprep.subr.bf16.mxu0 %v1268_v0 }
 0x1b1   :  { %v292_v27 = vpop.permute.xlu0 %291 }
 0x1b2   :  { %v294_v28 = vsel %vm123_vm1, %v292_v27, 0  ;;  %1008 = vmatmul.mubr.msk.bf16.vlgmr.msra.gmra.mrb[4].mxu1 %vm123_vm1, %v292_v27 }
 0x1b3   :  { %1018 = vmatpush3.bf16.xpose.msra.mxu1 %v294_v28  ;;  %1019 = vmatprep.mubr.msk.bf16.mxu1 %vm1269_vm0, %v1268_v0 }
 0x1b4   :  { %1029 = vmatprep.subr.bf16.mxu1 %v1268_v0 }
 0x1b6   :  { %1014 = vmatmul.mubr.msk.bf16.vlgmr.msra.gmra.mrb[8].mxu0 %vm123_vm1, %v1428_v18 }
 0x1b7   :  { %1025 = vmatprep.mubr.msk.bf16.mxu0 %vm1269_vm0, %v1268_v0 }
 0x1ba   :  { %1020 = vmatmul.mubr.msk.bf16.vlgmr.msra.gmra.mrb[8].mxu1 %vm123_vm1, %v240_v22 }
 0x1bb   :  { %1031 = vmatprep.mubr.msk.bf16.mxu1 %vm1269_vm0, %v1268_v0 }
 0x281   :  { %v284_v29 = vpop.f32.mrb[4].mxu0 }
 0x282   :  { %v339_v30 = vmul.f32 0.17677669, %v284_v29  ;;  %v1003_v31 = vpop.f32.mrb[5].mxu0 }
 0x283   :  { %v287_v32 = vpop.f32.mrb[6].mxu0 }
 0x284   :  { %v341_v33 = vmax.f32 %v339_v30, 0.0  ;;  %v1004_v34 = vpop.f32.mrb[7].mxu0 }
 0x285   :  { %v333_v35 = vpop.f32.mrb[4].mxu1 }
 0x286   :  { %v340_v36 = vmul.f32 0.17677669, %v333_v35  ;;  %v1009_v37 = vpop.f32.mrb[5].mxu1  ;;  %v428_v38 = vsel %vm427_vm2, %v341_v33, 0.0 }
 0x287   :  { %429 = vadd.xlane.f32.xlu1 %v428_v38  ;;  %v336_v39 = vpop.f32.mrb[6].mxu1 }
 0x288   :  { %v342_v40 = vmax.f32 %v340_v36, 0.0  ;;  %v1010_v41 = vpop.f32.mrb[7].mxu1 }
 0x289   :  { %v377_v42 = vpop.f32.mrb[8].mxu0 }
 0x28a   :  { %v423_v43 = vmul.f32 0.17677669, %v377_v42  ;;  %v1015_v44 = vpop.f32.mrb[9].mxu0  ;;  %v431_v45 = vsel %vm427_vm2, %v342_v40, 0.0  ;;  %v596_v42 = vsel %vm493_vm3, %v1424_v11, 0 }
 0x28b   :  { %v380_v46 = vpop.f32.mrb[10].mxu0  ;;  %432 = vadd.xlane.f32.xlu1 %v431_v45 }
 0x28c   :  { %v425_v47 = vmax.f32 %v423_v43, 0.0  ;;  %v1016_v48 = vpop.f32.mrb[11].mxu0  ;;  %v642_v43 = vsel %vm493_vm3, %v1430_v21, 0  ;;  %v1091_v21 = vld [vmem:[%s1537_s5] sm:$0xff]  }
 0x28d   :  { %v417_v49 = vpop.f32.mrb[8].mxu1  ;;  %v1092_v48 = vld [vmem:[%s1537_s5 + $0x8] sm:$0xff]   ;;  %s1271_s5 = smov 32  }
 0x28e   :  { %v424_v50 = vmul.f32 0.17677669, %v417_v49  ;;  %v1021_v51 = vpop.f32.mrb[9].mxu1  ;;  %v457_v52 = vsel %vm427_vm2, %v425_v47, 0.0  ;;  %v1093_v49 = vld [vmem:[#allocation11] sm:$0xff]  }
 0x28f   :  { %458 = vadd.xlane.f32.xlu0 %v457_v52  ;;  %v420_v53 = vpop.f32.mrb[10].mxu1  ;;  %v586_v51 = vunpack.c.l.bf16 %v1408_v3  ;;  %v587_v52 = vunpack.c.h.bf16 %v1408_v3 }
 0x290   :  { %v426_v54 = vmax.f32 %v424_v50, 0.0  ;;  %v1022_v55 = vpop.f32.mrb[11].mxu1  ;;  %v1094_v50 = vld [vmem:[#allocation11 + $0x8] sm:$0xff]  }
 0x292   :  { %v460_v56 = vsel %vm427_vm2, %v426_v54, 0.0 }
 0x293   :  { %461 = vadd.xlane.f32.xlu1 %v460_v56 }
 0x2a5   :  { %538 = vrot.lane.b32.xlu0 %v240_v22, %s1270_s6 }
 0x314   :  { %v430_v57 = vpop.xlane.xlu1 %429 }
 0x315   :  { %v434_v58 = vadd.f32 1e-08, %v430_v57 }
 0x317   :  { %1097 = vrcp.f32 %v434_v58 }
 0x318   :  { %v433_v59 = vpop.xlane.xlu1 %432 }
 0x319   :  { %v435_v60 = vadd.f32 1e-08, %v433_v59 }
 0x31b   :  { %1099 = vrcp.f32 %v435_v60 }
 0x31c   :  { %v459_v61 = vpop.xlane.xlu0 %458 }
 0x31d   :  { %v463_v62 = vadd.f32 1e-08, %v459_v61 }
 0x31f   :  { %1101 = vrcp.f32 %v463_v62 }
 0x320   :  { %v539_v63 = vpop.permute.xlu0 %538  ;;  %v462_v1 = vpop.xlane.xlu1 %461 }
 0x321   :  { %v1098_v2 = vpop.eup %1097  ;;  %v544_v4 = vsel %vm493_vm3, %v539_v63, 0  ;;  %v464_v5 = vadd.f32 1e-08, %v462_v1  ;;  %v684_v1 = vunpack.c.l.bf16 %v1411_v6 }
 0x322   :  { %1030 = vmatpush3.bf16.msra.mxu1 %v544_v4  ;;  %v437_v8 = vmul.f32 %v1098_v2, %v341_v33 }
 0x323   :  { %1103 = vrcp.f32 %v464_v5  ;;  %1041 = vmatprep.subr.bf16.mxu1 %v1268_v0 }
 0x324   :  { %vm441_vm4 = vcmp.gt.f32.partialorder %v437_v8, %v440_v7 }
 0x325   :  { %v1100_v9 = vpop.eup %1099  ;;  %v443_v10 = vsel %vm441_vm4, %v437_v8, 0.0 }
 0x326   :  { %v445_v12 = vsel %vm427_vm2, %v443_v10, 0.0  ;;  %v439_v13 = vmul.f32 %v1100_v9, %v342_v40 }
 0x327   :  { %446 = vadd.xlane.f32.xlu1 %v445_v12 }
 0x328   :  { %vm442_vm5 = vcmp.gt.f32.partialorder %v439_v13, %v440_v7 }
 0x329   :  { %v1102_v14 = vpop.eup %1101  ;;  %v444_v15 = vsel %vm442_vm5, %v439_v13, 0.0 }
 0x32a   :  { %v448_v16 = vsel %vm427_vm2, %v444_v15, 0.0  ;;  %v466_v17 = vmul.f32 %v1102_v14, %v425_v47 }
 0x32b   :  { %449 = vadd.xlane.f32.xlu1 %v448_v16 }
 0x32c   :  { %vm469_vm6 = vcmp.gt.f32.partialorder %v466_v17, %v440_v7 }
 0x32d   :  { %v1104_v19 = vpop.eup %1103  ;;  %v471_v20 = vsel %vm469_vm6, %v466_v17, 0.0 }
 0x32e   :  { %v473_v22 = vsel %vm427_vm2, %v471_v20, 0.0  ;;  %v468_v23 = vmul.f32 %v1104_v19, %v426_v54 }
 0x32f   :  { %474 = vadd.xlane.f32.xlu1 %v473_v22 }
 0x330   :  { %vm470_vm7 = vcmp.gt.f32.partialorder %v468_v23, %v440_v7 }
 0x331   :  { %v472_v24 = vsel %vm470_vm7, %v468_v23, 0.0 }
 0x332   :  { %v476_v25 = vsel %vm427_vm2, %v472_v24, 0.0 }
 0x333   :  { %477 = vadd.xlane.f32.xlu1 %v476_v25 }
 0x344   :  { %488 = vrot.lane.b32.xlu1 %v1428_v18, %s1270_s6 }
 0x3b4   :  { %v447_v26 = vpop.xlane.xlu1 %446 }
 0x3b5   :  { %v451_v27 = vadd.f32 1e-08, %v447_v26 }
 0x3b7   :  { %1105 = vrcp.f32 %v451_v27 }
 0x3b8   :  { %v450_v28 = vpop.xlane.xlu1 %449 }
 0x3b9   :  { %v452_v29 = vadd.f32 1e-08, %v450_v28 }
 0x3bb   :  { %1107 = vrcp.f32 %v452_v29 }
 0x3bc   :  { %v475_v30 = vpop.xlane.xlu1 %474 }
 0x3bd   :  { %v479_v31 = vadd.f32 1e-08, %v475_v30 }
 0x3bf   :  { %1109 = vrcp.f32 %v479_v31 }
 0x3c0   :  { %v478_v32 = vpop.xlane.xlu1 %477 }
 0x3c1   :  { %v1106_v33 = vpop.eup %1105  ;;  %v480_v34 = vadd.f32 1e-08, %v478_v32 }
 0x3c2   :  { %v455_v35 = vmul.f32 %v1106_v33, %v443_v10 }
 0x3c3   :  { %1111 = vrcp.f32 %v480_v34 }
 0x3c4   :  { %v489_v36 = vpop.permute.xlu1 %488  ;;  %v485_v18 = vpack.c.bf16 %v455_v35, %v455_v35 }
 0x3c5   :  { %v1108_v37 = vpop.eup %1107  ;;  %v495_v38 = vsel %vm493_vm3, %v489_v36, 0 }
 0x3c6   :  { %v456_v39 = vmul.f32 %v1108_v37, %v444_v15  ;;  %1024 = vmatpush3.bf16.msra.mxu0 %v495_v38 }
 0x3c7   :  { %1035 = vmatprep.subr.bf16.mxu0 %v1268_v0 }
 0x3c8   :  { %v486_v40 = vpack.c.bf16 %v456_v39, %v456_v39 }
 0x3c9   :  { %v1110_v41 = vpop.eup %1109  ;;  %1026 = vmatmul.mubr.msk.bf16.vlgmr.msra.gmra.mrb[12].mxu0 %vm427_vm2, %v485_v18 }
 0x3ca   :  { %1032 = vmatmul.mubr.msk.bf16.vlgmr.msra.gmra.mrb[12].mxu1 %vm427_vm2, %v486_v40  ;;  %1036 = vmatpush3.bf16.msra.mxu0 %v596_v42  ;;  %v483_v44 = vmul.f32 %v1110_v41, %v471_v20 }
 0x3cb   :  { %1042 = vmatpush3.bf16.msra.mxu1 %v642_v43  ;;  %1037 = vmatprep.mubr.msk.bf16.mxu0 %vm1269_vm0, %v1268_v0 }
 0x3cc   :  { %1043 = vmatprep.mubr.msk.bf16.mxu1 %vm1269_vm0, %v1268_v0  ;;  %1047 = vmatprep.subr.bf16.mxu0 %v1268_v0  ;;  %v590_v46 = vpack.c.bf16 %v483_v44, %v483_v44 }
 0x3cd   :  { %v1112_v45 = vpop.eup %1111  ;;  %1055 = vmatprep.subr.bf16.mxu1 %v1268_v0 }
 0x3ce   :  { %v484_v11 = vmul.f32 %v1112_v45, %v472_v24 }
 0x3d0   :  { %v591_v47 = vpack.c.bf16 %v484_v11, %v484_v11 }
 0x3d1   :  { %1038 = vmatmul.mubr.msk.bf16.vlgmr.msra.gmra.mrb[16].mxu0 %vm427_vm2, %v590_v46 }
 0x3d2   :  { %1044 = vmatmul.mubr.msk.bf16.vlgmr.msra.gmra.mrb[16].mxu1 %vm427_vm2, %v591_v47  ;;  %1048 = vmatpush3.bf16.msra.mxu0 %v1091_v21 }
 0x3d3   :  { %1049 = vmatprep.subr.bf16.mxu0 %v1268_v0  ;;  %1051 = vmatprep.mubr.msk.bf16.mxu0 %vm1269_vm0, %v1268_v0 }
 0x3d4   :  { %1059 = vmatprep.mubr.msk.bf16.mxu1 %vm1269_vm0, %v1268_v0  ;;  %1056 = vmatpush3.bf16.msra.mxu1 %v1093_v49 }
 0x3d5   :  { %1057 = vmatprep.subr.bf16.mxu1 %v1268_v0  ;;  %v685_v0 = vunpack.c.h.bf16 %v1411_v6 }
 0x3d6   :  { %1050 = vmatpush3.bf16.msra.mxu0 %v1092_v48 }
 0x3d8   :  { %1058 = vmatpush3.bf16.msra.mxu1 %v1094_v50 }
 0x49c   :  { %v531_v53 = vpop.f32.mrb[12].mxu0 }
 0x49d   :  { %v588_v54 = vadd.f32 %v586_v51, %v531_v53  ;;  %v1027_v55 = vpop.f32.mrb[13].mxu0  ;;  %v580_v56 = vpop.f32.mrb[12].mxu1 }
 0x49e   :  { %v589_v57 = vadd.f32 %v587_v52, %v580_v56  ;;  %v534_v58 = vpop.f32.mrb[14].mxu0  ;;  %v1033_v59 = vpop.f32.mrb[13].mxu1 }
 0x49f   :  { %v1028_v60 = vpop.f32.mrb[15].mxu0  ;;  %v583_v61 = vpop.f32.mrb[14].mxu1 }
 0x4a0   :  { %v688_v62 = vpack.c.bf16 %v589_v57, %v588_v54  ;;  %v1034_v63 = vpop.f32.mrb[15].mxu1 }
 0x4a2   :  { %1052 = vmatmul.mubr.msk.bf16.vlgmr.msra.gmra.mrb[20].mxu0 %vm123_vm1, %v688_v62 }
 0x4a4   :  { %v632_v2 = vpop.f32.mrb[16].mxu0 }
 0x4a5   :  { %v686_v4 = vadd.f32 %v684_v1, %v632_v2  ;;  %v1039_v3 = vpop.f32.mrb[17].mxu0  ;;  %v678_v5 = vpop.f32.mrb[16].mxu1 }
 0x4a6   :  { %v687_v7 = vadd.f32 %v685_v0, %v678_v5  ;;  %v635_v8 = vpop.f32.mrb[18].mxu0  ;;  %v1045_v9 = vpop.f32.mrb[17].mxu1 }
 0x4a7   :  { %v1040_v10 = vpop.f32.mrb[19].mxu0  ;;  %v681_v12 = vpop.f32.mrb[18].mxu1 }
 0x4a8   :  { %v751_v13 = vpack.c.bf16 %v687_v7, %v686_v4  ;;  %v1046_v14 = vpop.f32.mrb[19].mxu1 }
 0x4aa   :  { %1060 = vmatmul.mubr.msk.bf16.vlgmr.msra.gmra.mrb[20].mxu1 %vm123_vm1, %v751_v13 }
 0x575   :  { %v742_v15 = vpop.f32.mrb[20].mxu0 }
 0x576   :  { %v749_v16 = vmax.f32 %v742_v15, 0.0  ;;  %v1053_v17 = vpop.f32.mrb[21].mxu0 }
 0x577   :  { %v745_v19 = vpop.f32.mrb[22].mxu0 }
 0x578   :  { %v750_v20 = vmax.f32 %v745_v19, 0.0  ;;  %v1054_v22 = vpop.f32.mrb[23].mxu0  ;;  %v814_v6 = vsel %vm123_vm1, %v749_v16, 0.0 }
 0x579   :  { %815 = vadd.xlane.f32.xlu1 %v814_v6 }
 0x57a   :  { %v817_v23 = vsel %vm123_vm1, %v750_v20, 0.0 }
 0x57b   :  { %818 = vadd.xlane.f32.xlu0 %v817_v23 }
 0x57d   :  { %v805_v24 = vpop.f32.mrb[20].mxu1 }
 0x57e   :  { %v812_v25 = vmax.f32 %v805_v24, 0.0  ;;  %v1061_v26 = vpop.f32.mrb[21].mxu1 }
 0x57f   :  { %v808_v27 = vpop.f32.mrb[22].mxu1 }
 0x580   :  { %v813_v28 = vmax.f32 %v808_v27, 0.0  ;;  %v1062_v29 = vpop.f32.mrb[23].mxu1  ;;  %v841_v30 = vsel %vm123_vm1, %v812_v25, 0.0 }
 0x581   :  { %842 = vadd.xlane.f32.xlu1 %v841_v30 }
 0x582   :  { %v844_v31 = vsel %vm123_vm1, %v813_v28, 0.0 }
 0x585   :  { %845 = vadd.xlane.f32.xlu1 %v844_v31 }
 0x606   :  { %v816_v32 = vpop.xlane.xlu1 %815 }
 0x607   :  { %v821_v33 = vmul.f32 0.03125, %v816_v32 }
 0x608   :  { %v819_v34 = vpop.xlane.xlu0 %818 }
 0x609   :  { %v823_v35 = vsub.f32 %v749_v16, %v821_v33  ;;  %v822_v36 = vmul.f32 0.03125, %v819_v34 }
 0x60b   :  { %v824_v37 = vsub.f32 %v750_v20, %v822_v36  ;;  %v825_v38 = vmul.f32 %v823_v35, %v823_v35 }
 0x60d   :  { %v827_v39 = vsel %vm123_vm1, %v825_v38, 0.0  ;;  %v826_v18 = vmul.f32 %v824_v37, %v824_v37 }
 0x60e   :  { %v843_v40 = vpop.xlane.xlu1 %842  ;;  %828 = vadd.xlane.f32.xlu1 %v827_v39 }
 0x60f   :  { %v847_v41 = vmul.f32 0.03125, %v843_v40  ;;  %v830_v42 = vsel %vm123_vm1, %v826_v18, 0.0 }
 0x610   :  { %831 = vadd.xlane.f32.xlu0 %v830_v42 }
 0x611   :  { %v849_v43 = vsub.f32 %v812_v25, %v847_v41 }
 0x612   :  { %v846_v44 = vpop.xlane.xlu1 %845 }
 0x613   :  { %v848_v45 = vmul.f32 0.03125, %v846_v44  ;;  %v851_v11 = vmul.f32 %v849_v43, %v849_v43 }
 0x615   :  { %v850_v21 = vsub.f32 %v813_v28, %v848_v45  ;;  %v853_v46 = vsel %vm123_vm1, %v851_v11, 0.0 }
 0x616   :  { %854 = vadd.xlane.f32.xlu1 %v853_v46 }
 0x617   :  { %v852_v47 = vmul.f32 %v850_v21, %v850_v21 }
 0x619   :  { %v856_v48 = vsel %vm123_vm1, %v852_v47, 0.0 }
 0x61a   :  { %857 = vadd.xlane.f32.xlu0 %v856_v48 }
 0x69b   :  { %v829_v49 = vpop.xlane.xlu1 %828 }
 0x69c   :  { %v833_v50 = vmul.f32 0.03125, %v829_v49 }
 0x69d   :  { %v832_v51 = vpop.xlane.xlu0 %831 }
 0x69e   :  { %v835_v52 = vadd.f32 1e-06, %v833_v50  ;;  %v834_v53 = vmul.f32 0.03125, %v832_v51 }
 0x6a0   :  { %1113 = vrsqrt.f32 %v835_v52  ;;  %v836_v54 = vadd.f32 1e-06, %v834_v53 }
 0x6a2   :  { %1115 = vrsqrt.f32 %v836_v54 }
 0x6a3   :  { %v855_v55 = vpop.xlane.xlu1 %854 }
 0x6a4   :  { %v859_v56 = vmul.f32 0.03125, %v855_v55 }
 0x6a6   :  { %v861_v57 = vadd.f32 1e-06, %v859_v56 }
 0x6a7   :  { %v858_v58 = vpop.xlane.xlu0 %857 }
 0x6a8   :  { %1117 = vrsqrt.f32 %v861_v57  ;;  %v860_v59 = vmul.f32 0.03125, %v858_v58 }
 0x6aa   :  { %v1114_v60 = vpop.eup %1113  ;;  %v862_v61 = vadd.f32 1e-06, %v860_v59 }
 0x6ab   :  { %v839_v63 = vmul.f32 %v1114_v60, %v823_v35 }
 0x6ac   :  { %v1116_v62 = vpop.eup %1115  ;;  %1119 = vrsqrt.f32 %v862_v61 }
 0x6ad   :  { %v840_v1 = vmul.f32 %v1116_v62, %v824_v37 }
 0x6af   :  { %v1075_v0 = vpack.i.bf16 %v840_v1, %v839_v63 }
 0x6b1   :  { %1076 = vrot.lane.b32.xlu1 %v1075_v0, %s1271_s5 }
 0x6b2   :  { %v1118_v2 = vpop.eup %1117 }
 0x6b3   :  { %v865_v4 = vmul.f32 %v1118_v2, %v849_v43 }
 0x6b5   :  { %v867_v3 = vadd.f32 %v865_v4, %v839_v63 }
 0x6b6   :  { %v1120_v5 = vpop.eup %1119 }
 0x6b7   :  { %v866_v7 = vmul.f32 %v1120_v5, %v850_v21  ;;  %v869_v15 = vmul.f32 0.5, %v867_v3 }
 0x6b9   :  { %v868_v8 = vadd.f32 %v866_v7, %v840_v1  ;;  %v1080_v9 = vpack.i.bf16 %v866_v7, %v865_v4 }
 0x6bb   :  { %1081 = vrot.lane.b32.xlu0 %v1080_v9, %s1263_s13  ;;  %v870_v14 = vmul.f32 0.5, %v868_v8 }
 0x723   :  { %v1077_v10 = vpop.permute.xlu1 %1076 }
 0x724   :  { %v1079_v12 = vunpack.i.h.bf16 %v1077_v10  ;;  %v1078_v13 = vunpack.i.l.bf16 %v1077_v10 }
 0x726   :  { %v888_v20 = vsel %vm123_vm1, %v870_v14, %v1079_v12  ;;  %v887_v22 = vsel %vm123_vm1, %v869_v15, %v1078_v13 }
 0x72d   :  { %v1082_v16 = vpop.permute.xlu0 %1081 }
 0x72e   :  { %v1084_v17 = vunpack.i.h.bf16 %v1082_v16  ;;  %v1083_v19 = vunpack.i.l.bf16 %v1082_v16 }
 0x730   :  { %v890_v6 = vsel %vm889_vm8, %v887_v22, %v1083_v19  ;;  %v891_v23 = vsel %vm889_vm8, %v888_v20, %v1084_v17 }
 0x731   :  { %v893_v24 = vsel %vm892_vm9, %v890_v6, 0.0  ;;  %v894_v25 = vsel %vm892_vm9, %v891_v23, 0.0 }
 0x732   :  { %v953_v26 = vpack.c.bf16 %v894_v25, %v893_v24 }
 0x734   :  { %954 = vst [vmem:[#allocation12] sm:$0xff] %v953_v26  }
 0x735   :  { %1242 = shalt.err (!%p1239_p2)
}
 0x736   :  { %s1243_s2 = scalar_lea.hbm %s1539_s7, 128 }
 0x737   :  { %p1244_p3 = scmp.ne.s32.totalorder %s1539_s7, %s1243_s2  ;;  %p1247_p4 = scmp.lt.u32.totalorder %s1243_s2, %s1539_s7 }
 0x739   :  { %p1249_p5 = pnand %p1247_p4, %p1244_p3 }
 0x73b   :  { %1252 = shalt.err (!%p1249_p5)
}
 0x73c   :  { %916 = dma.vmem_to_hbm [thread:$0]  %s911_s21, 128, %s1539_s7, [#allocation5], %s1263_s13, %s1263_s13, %s1264_s14  }
 0x73d   :  { %1259 = dma.done.wait [#allocation5], 128  }
 0x73e   :  { %1260 = vsyncadd [#allocation5], 4294967168 }
 0x73f   :  { %920 = vsyncpa [#allocation4], 1 }
 0x740   :  { %921 = vsyncpa [#allocation7], 1 }
 0x741   :  { %922 = vsyncpa [#allocation10], 1 }
 0x742   :  { %923 = vsyncpa [#allocation5], 1 }

</bundles_post_ra>
